<compile_context>
chip_gen: v7x
topology: tpu7x:2x2x1
jax: 0.10.0
libtpu: 0.0.40
codegen_flags: <defaults>
</compile_context>

<pallas_src>
import functools

import jax
import jax.numpy as jnp
import numpy as np
from jax.experimental import pallas as pl
from jax.experimental.pallas import tpu as pltpu


def _round_up(x, m):
    return (x + m - 1) // m * m


# ----------------------------------------------------------------------------
# Kernel body: gather TB embedding rows for this batch tile.
#   lab_sref : (B_pad,) int32 in SMEM (scalar prefetch) — post-token_drop labels
#   tab_ref  : (V, H) table, VMEM-resident (same block every grid step)
#   out_ref  : (TB, H) output tile for batch tile i
# ----------------------------------------------------------------------------
def _embed_gather_kernel(tb, lab_sref, tab_ref, out_ref):
    i = pl.program_id(0)

    @pl.loop(0, tb)
    def _(k):
        lab = lab_sref[i * tb + k]                       # scalar read from SMEM
        out_ref[pl.ds(k, 1), :] = tab_ref[pl.ds(lab, 1), :]   # dynamic-row copy


def _drop_mask(labels, dropout_prob, train, force_drop_ids, rng_key):
    """Mirror of LabelEmbedder.token_drop gating logic (returns bool (B,) or None)."""
    use_dropout = dropout_prob > 0
    if (train and use_dropout) or (force_drop_ids is not None):
        if force_drop_ids is None:
            if rng_key is None:
                raise ValueError(
                    "rng_key is required when train=True and dropout_prob > 0")
            return jax.random.uniform(rng_key, (labels.shape[0],)) < dropout_prob
        return force_drop_ids == 1
    return None


def label_embedder(labels, table, *, num_classes, dropout_prob, train,
                   force_drop_ids=None, rng_key=None, max_rows_per_step=128):
    """Pallas implementation of LabelEmbedder.forward(labels, train, force_drop_ids)."""
    (B,) = labels.shape
    V, H = table.shape
    labels = labels.astype(jnp.int32)

    # token_drop: tiny (B,) select done in the wrapper.
    drop = _drop_mask(labels, dropout_prob, train, force_drop_ids, rng_key)
    if drop is not None:
        if V < num_classes + 1:
            raise ValueError(
                "label dropout requested but the embedding table has no CFG row "
                f"(table rows={V}, need {num_classes + 1})")
        labels = jnp.where(drop, jnp.int32(num_classes), labels)

    itemsize = jnp.dtype(table.dtype).itemsize
    sub = max(8, 32 // itemsize)                 # sublane pack: f32->8, bf16->16, int8->32
    tb = min(_round_up(B, sub), _round_up(max_rows_per_step, sub))
    b_pad = _round_up(B, tb)
    num_tiles = b_pad // tb

    labels_pad = labels if b_pad == B else jnp.pad(labels, (0, b_pad - B))

    cost = pl.CostEstimate(
        flops=0,
        transcendentals=0,
        bytes_accessed=V * H * itemsize          # table read once
        + b_pad * H * itemsize                   # output rows written
        + b_pad * 4,                             # labels
    )

    out = pl.pallas_call(
        functools.partial(_embed_gather_kernel, tb),
        out_shape=jax.ShapeDtypeStruct((b_pad, H), table.dtype),
        grid_spec=pltpu.PrefetchScalarGridSpec(
            num_scalar_prefetch=1,
            grid=(num_tiles,),
            in_specs=[pl.BlockSpec((V, H), lambda i, lab: (0, 0))],   # table resident
            out_specs=pl.BlockSpec((tb, H), lambda i, lab: (i, 0)),   # dense (TB,H) tile
        ),
        compiler_params=pltpu.CompilerParams(
            dimension_semantics=("parallel",) if num_tiles > 1 else ("arbitrary",)),
        cost_estimate=cost,
    )(labels_pad, table)

    return out[:B] if b_pad != B else out


# ----------------------------------------------------------------------------
# Pure-JAX reference (mirrors the PyTorch forward exactly) for verification.
# ----------------------------------------------------------------------------
def label_embedder_ref(labels, table, *, num_classes, dropout_prob,
                       train, force_drop_ids=None, rng_key=None):
    labels = labels.astype(jnp.int32)
    drop = _drop_mask(labels, dropout_prob, train, force_drop_ids, rng_key)
    if drop is not None:
        labels = jnp.where(drop, jnp.int32(num_classes), labels)
    return table[labels]


if __name__ == "__main__":
    # Small, module-consistent shapes.
    B = 8
    num_classes = 10
    hidden_size = 128            # multiple of 128 -> lane-dense rows/stores
    dropout_prob = 0.1           # > 0 -> embedding table has a CFG row

    key = jax.random.PRNGKey(0)
    k_tab, k_lab, k_drop, k_lab2 = jax.random.split(key, 4)

    V = num_classes + (1 if dropout_prob > 0 else 0)
    table = jax.random.normal(k_tab, (V, hidden_size), jnp.float32)
    labels = jax.random.randint(k_lab, (B,), 0, num_classes, dtype=jnp.int32)
    force_drop_ids = jnp.array([1, 0, 0, 1, 0, 0, 0, 1], jnp.int32)

    # TODO(synk): torch.rand-based drop RNG has no bit-exact JAX equivalent;
    # the train-time mask uses jax.random with a shared key in kernel and ref.

    def check(out, ref):
        np.testing.assert_allclose(np.asarray(out), np.asarray(ref), rtol=0, atol=0)

    # Case 1: eval (no dropout applied)
    out = jax.block_until_ready(
        label_embedder(labels, table, num_classes=num_classes,
                       dropout_prob=dropout_prob, train=False))
    check(out, label_embedder_ref(labels, table, num_classes=num_classes,
                                  dropout_prob=dropout_prob, train=False))

    # Case 2: training with CFG label dropout (same rng key -> same mask)
    out = jax.block_until_ready(
        label_embedder(labels, table, num_classes=num_classes,
                       dropout_prob=dropout_prob, train=True, rng_key=k_drop))
    check(out, label_embedder_ref(labels, table, num_classes=num_classes,
                                  dropout_prob=dropout_prob, train=True,
                                  rng_key=k_drop))

    # Case 3: explicit force_drop_ids
    out = jax.block_until_ready(
        label_embedder(labels, table, num_classes=num_classes,
                       dropout_prob=dropout_prob, train=False,
                       force_drop_ids=force_drop_ids))
    check(out, label_embedder_ref(labels, table, num_classes=num_classes,
                                  dropout_prob=dropout_prob, train=False,
                                  force_drop_ids=force_drop_ids))

    # Case 4: non-aligned batch with a multi-step grid (exercises padding,
    # batch tiling, and the "parallel" batch-tile axis).
    B2 = 20
    labels2 = jax.random.randint(k_lab2, (B2,), 0, num_classes, dtype=jnp.int32)
    out = jax.block_until_ready(
        label_embedder(labels2, table, num_classes=num_classes,
                       dropout_prob=dropout_prob, train=False,
                       max_rows_per_step=16))
    check(out, label_embedder_ref(labels2, table, num_classes=num_classes,
                                  dropout_prob=dropout_prob, train=False))

    print("KERNEL_OK")
</pallas_src>

<mosaic_0001>
module attributes {stable_mosaic.version = 11 : i64} {
  func.func @_embed_gather_kernel(%arg0: i32, %arg1: memref<8xi32, #tpu.memory_space<smem>>, %arg2: memref<11x128xf32, #tpu.memory_space<vmem>>, %arg3: memref<8x128xf32, #tpu.memory_space<vmem>>) attributes {dimension_semantics = [#tpu.dimension_semantics<arbitrary>], iteration_bounds = array<i64: 1>, scalar_prefetch = 1 : i64, scratch_operands = 0 : i64, tpu.core_type = #tpu.core_type<tc>, window_params = [{pipeline_mode = #tpu.pipeline_mode<synchronous>, transform_indices = @transform_0, window_bounds = array<i64: 11, 128>}, {transform_indices = @transform_1, window_bounds = array<i64: 8, 128>}]} {
    %c0_i32 = arith.constant 0 : i32
    %c8_i32 = arith.constant 8 : i32
    %0 = arith.addi %c0_i32, %c8_i32 : i32
    %c1_i32 = arith.constant 1 : i32
    scf.for %arg4 = %c0_i32 to %0 step %c1_i32  : i32 {
      %c1_i32_1 = arith.constant 1 : i32
      %1 = arith.muli %arg4, %c1_i32_1 : i32
      %c0_i32_2 = arith.constant 0 : i32
      %2 = arith.addi %c0_i32_2, %1 : i32
      %c8_i32_3 = arith.constant 8 : i32
      %3 = arith.muli %arg0, %c8_i32_3 : i32
      %4 = arith.addi %3, %2 : i32
      %5 = arith.index_cast %4 : i32 to index
      %6 = memref.load %arg1[%5] : memref<8xi32, #tpu.memory_space<smem>>
      %7 = arith.index_cast %6 : i32 to index
      %c0 = arith.constant 0 : index
      %8 = vector.load %arg2[%7, %c0] : memref<11x128xf32, #tpu.memory_space<vmem>>, vector<1x128xf32>
      %9 = arith.index_cast %2 : i32 to index
      %c0_4 = arith.constant 0 : index
      %10 = vector.load %arg3[%9, %c0_4] : memref<8x128xf32, #tpu.memory_space<vmem>>, vector<1x128xf32>
      tpu.vector_store %arg3[%9, %c0_4], %8 {strides = array<i32>} : memref<8x128xf32, #tpu.memory_space<vmem>>, vector<1x128xf32>,
    }
    %c8_i32_0 = arith.constant 8 : i32
    return
  }
  func.func @transform_0(%arg0: i32, %arg1: memref<8xi32, #tpu.memory_space<smem>>) -> (i32, i32) {
    %c0_i32 = arith.constant 0 : i32
    %c0_i32_0 = arith.constant 0 : i32
    %c0_i32_1 = arith.constant 0 : i32
    return %c0_i32, %c0_i32_0 : i32, i32
  }
  func.func @transform_1(%arg0: i32, %arg1: memref<8xi32, #tpu.memory_space<smem>>) -> (i32, i32) {
    %c0_i32 = arith.constant 0 : i32
    %c0_i32_0 = arith.constant 0 : i32
    return %arg0, %c0_i32 : i32, i32
  }
}

</mosaic_0001>

<bundles_post_ra>
// kernel: tpu_custom_call.1
= control target key start
LH: loop header
LB: loop body
LE: loop exit
PB: predicated region body
PF: predicated region fallthrough
CT: control target
= control target key end

     0   :  { %s200_s0 = inlined_call_operand.hbm [shape: s32[8], index: 0, kind: input, shape index: {}]   ;;  %s201_s1 = inlined_call_operand.hbm [shape: f32[11,128], index: 1, kind: input, shape index: {}]   ;;  %s202_s2 = inlined_call_operand.hbm [shape: f32[8,128], index: 2, kind: output, shape index: {}]  }
   0x1   :  { %s76_s11 = scalar_lea.hbm %s200_s0, 16 }
   0x2   :  { %p77_p0 = scmp.ne.s32.totalorder %s200_s0, %s76_s11  ;;  %p80_p1 = scmp.lt.u32.totalorder %s76_s11, %s200_s0 }
   0x4   :  { %p82_p2 = pnand %p80_p1, %p77_p0 }
   0x6   :  { %85 = shalt.err (!%p82_p2)  }
   0x7   :  { %s144_s16 = smov [#allocation3]  }
   0x8   :  { %8 = dma.hbm_to_smem %s200_s0, 16, %s144_s16, [#allocation2] }
   0x9   :  { %134 = dma.done.wait [#allocation2], 16 }
   0xa   :  { %135 = vsyncadd [#allocation2], 4294967280 }
   0xb   :  { %10 = sfence }
   0xc   :  { %11 = vsyncpa [#allocation5], 0 }
   0xd   :  { %12 = vsyncpa [#allocation6], 0  ;;  %s145_s19 = smov [#allocation4]   ;;  %s86_s23 = scalar_lea.hbm %s201_s1, 256 }
   0xe   :  { %s18_s20 = sshll.u32 %s145_s19, 4  ;;  %p87_p3 = scmp.ne.s32.totalorder %s201_s1, %s86_s23  ;;  %s19_s20 = int_to_ptr.vmem [resolvable:$true] %s18_s20 }
   0xf   :  { %p90_p4 = scmp.lt.u32.totalorder %s86_s23, %s201_s1 }
  0x11   :  { %p92_p5 = pnand %p90_p4, %p87_p3 }
  0x13   :  { %95 = shalt.err (!%p92_p5)
}
  0x14   :  { %s96_s0 = scalar_lea.vmem %s19_s20, 256  ;;  %p101_p7 = scmp.lt.s32.totalorder %s19_s20, %s19_s20 }
  0x15   :  { %p97_p6 = scmp.ne.s32.totalorder %s19_s20, %s96_s0  ;;  %p102_p8 = scmp.lt.s32.totalorder %s96_s0, %s96_s0 }
  0x17   :  { %p103_p9 = por %p102_p8, %p101_p7 }
  0x19   :  { %p104_p10 = pnand %p103_p9, %p97_p6 }
  0x1b   :  { %107 = shalt.err (!%p104_p10)
}
  0x1c   :  { %s146_s28 = smov 128   ;;  %s147_s29 = smov 8  }
  0x1d   :  { %24 = dma.hbm_to_vmem [thread:$0]  %s201_s1, 256, %s19_s20, [#allocation5], %s146_s28, %s146_s28, %s147_s29  }
  0x1e   :  { %136 = dma.done.wait [#allocation5], 256  }
  0x1f   :  { %137 = vsyncadd [#allocation5], 4294967040  ;;  %s140_s4 = smov 0  }
  0x20 LB: > { %s36_s5 = sld [smem:[#allocation3 + %s142_s4]]  ;;  %s39_s7 = scalar_lea.vmem [#allocation7], %s142_s4  ;;  %s142_s4 = sphi %s140_s4, %s33_s4  }
  0x21   : > { %s33_s4 = sadd.s32 1, %s142_s4  }
  0x22   : > { %p30_p11 = scmp.ge.s32.totalorder %s33_s4, 8  }
  0x23   :  { %s148_s8 = smov (%p30_p11), [#allocation7]  }
  0x24   :  { %32 = sbr.rel (!%p30_p11) target bundleno = 32 (0x20), region = 37  ;;  %s47_s9 = sshll.u32 (%p30_p11), %s148_s8, 4  ;;  %s48_s9 = int_to_ptr.vmem [resolvable:$true] %s47_s9 }
  0x25   :  { %s108_s10 = scalar_lea.vmem (%p30_p11), %s48_s9, 128  ;;  %p113_p13 = scmp.lt.s32.totalorder (%p30_p11), %s48_s9, %s48_s9 }
  0x26   : > { %s37_s6 = scalar_lea.vmem [#allocation4], %s36_s5  ;;  %p109_p12 = scmp.ne.s32.totalorder (%p30_p11), %s48_s9, %s108_s10 }
  0x27   : > { %v38_v0 = vld [vmem:[%s37_s6] sm:$0x1]  ;;  %p114_p0 = scmp.lt.s32.totalorder (%p30_p11), %s108_s10, %s108_s10 }
  0x28   : > { %40 = vst [vmem:[%s39_s7] sm:$0x1] %v38_v0 }
  0x29   :  { %p115_p1 = por (%p30_p11), %p114_p0, %p113_p13 }
  0x2b   :  { %p116_p2 = pnand %p115_p1, %p109_p12 }
  0x2d   :  { %119 = shalt.err (!%p116_p2)
}
  0x2e   :  { %s120_s12 = scalar_lea.hbm %s202_s2, 128 }
  0x2f   :  { %p121_p3 = scmp.ne.s32.totalorder %s202_s2, %s120_s12  ;;  %p124_p4 = scmp.lt.u32.totalorder %s120_s12, %s202_s2 }
  0x31   :  { %p126_p5 = pnand %p124_p4, %p121_p3 }
  0x33   :  { %129 = shalt.err (!%p126_p5)
}
  0x34   :  { %50 = dma.vmem_to_hbm [thread:$0]  %s48_s9, 128, %s202_s2, [#allocation6]  }
  0x35   :  { %138 = dma.done.wait [#allocation6], 128  }
  0x36   :  { %139 = vsyncadd [#allocation6], 4294967168 }
  0x37   :  { %54 = vsyncpa [#allocation5], 1 }
  0x38   :  { %55 = vsyncpa [#allocation6], 1 }

</bundles_post_ra>
